<compile_context>
chip_gen: v6e
topology: v6e:2x2x1
jax: 0.10.0
libtpu: 0.0.40
codegen_flags: <defaults>
</compile_context>

<pallas_src>
import functools

import jax
import jax.numpy as jnp
from jax.experimental import pallas as pl
from jax.experimental.pallas import tpu as pltpu

_TARGET_BLOCK_BYTES = 4 * 1024 * 1024   # ~4 MiB per block (per buffer)
_VMEM_LIMIT_BYTES = 48 * 1024 * 1024    # > v5e's 16 MiB default, < v7x's 64 MiB physical
_PALLAS_MIN_ELEMS = 1 << 18             # below this, a fused XLA select is strictly faster


def _round_up(n, m):
    return ((n + m - 1) // m) * m


def _step_kernel(x_ref, o_ref, *, threshold_value, above_value, below_value):
    """out = where(x > threshold, above_value, below_value); params are Python floats
    (lower to immediate splats, no captured traced constants)."""
    x = x_ref[...]
    o_ref[...] = jnp.where(x > threshold_value, above_value, below_value).astype(
        o_ref.dtype
    )


def _fold_constants(threshold_value, min_value, max_value):
    t = float(threshold_value)
    m = float(min_value)
    mx = float(max_value)
    above = mx                          # x >  threshold  -> max_value
    below = (-m) if (m < t) else mx     # x <= threshold (or NaN)
    return t, above, below


def step_forward(x, threshold_value=0.0, min_value=0.0, max_value=1.0, *,
                 use_pallas=None):
    """Elementwise Step op on an NCHW (or any-shape) float array."""
    t, above, below = _fold_constants(threshold_value, min_value, max_value)
    orig_shape = x.shape
    total = x.size
    if total == 0:
        return x

    if use_pallas is None:
        use_pallas = total >= _PALLAS_MIN_ELEMS
    if not use_pallas:
        # Tiny-tensor fast path: fused XLA select (no kernel launch overhead).
        return jnp.where(x > t, above, below).astype(x.dtype)

    itemsize = jnp.dtype(x.dtype).itemsize

    # Lane-dense layout. Reshapes are free; only non-128-aligned totals pad
    # (and only by < 128 elements).
    if total % 512 == 0:
        lanes = 512
    elif total % 256 == 0:
        lanes = 256
    else:
        lanes = 128

    xf = x.reshape(-1)
    padded_total = _round_up(total, lanes)
    if padded_total != total:
        # TODO(synk): replace pad/slice with an in-kernel masked tail
        # (scalar-prefetched `total`) to avoid the extra HBM passes on ragged shapes.
        xf = jnp.pad(xf, (0, padded_total - total))
    rows = padded_total // lanes
    x2d = xf.reshape(rows, lanes)

    # Block geometry: ~4 MiB blocks, sublane-packing-aware row multiples,
    # >= 2 balanced grid steps when possible (v7x 2-TC split, no near-empty tail).
    row_mult = max(8, 32 // itemsize)           # f32: 8, bf16: 16, int8: 32
    target_rows = max(row_mult, _TARGET_BLOCK_BYTES // (lanes * itemsize))
    if rows < 2 * row_mult:
        block_rows = rows                       # single full-array block
    else:
        nblk = max(2, pl.cdiv(rows, target_rows))
        block_rows = min(rows, _round_up(pl.cdiv(rows, nblk), row_mult))
    grid = (pl.cdiv(rows, block_rows),)

    kernel = functools.partial(
        _step_kernel,
        threshold_value=t,
        above_value=above,
        below_value=below,
    )

    cost = pl.CostEstimate(
        flops=rows * lanes,
        transcendentals=0,
        bytes_accessed=2 * rows * lanes * itemsize,
    )

    out2d = pl.pallas_call(
        kernel,
        out_shape=jax.ShapeDtypeStruct((rows, lanes), x.dtype),
        grid=grid,
        in_specs=[pl.BlockSpec((block_rows, lanes), lambda i: (i, 0))],
        out_specs=pl.BlockSpec((block_rows, lanes), lambda i: (i, 0)),
        compiler_params=pltpu.CompilerParams(
            dimension_semantics=("parallel",),
            vmem_limit_bytes=_VMEM_LIMIT_BYTES,
        ),
        cost_estimate=cost,
    )(x2d)

    out = out2d.reshape(-1)
    if padded_total != total:
        out = out[:total]
    return out.reshape(orig_shape)


def step_reference(x, threshold_value=0.0, min_value=0.0, max_value=1.0):
    """Pure-JAX reference matching PyTorch Step exactly (unfused form)."""
    y = jnp.where(x > threshold_value, x, jnp.full_like(x, min_value))
    z = -y
    return jnp.where(z > -threshold_value, z, jnp.full_like(z, max_value))


if __name__ == "__main__":
    key = jax.random.PRNGKey(0)

    # Primary demo input: small NCHW feature map (total is 512-aligned -> no pad).
    x = jax.random.normal(key, (2, 4, 16, 16), dtype=jnp.float32)
    out = jax.block_until_ready(step_forward(x, 0.0, 0.0, 1.0, use_pallas=True))
    ref = step_reference(x, 0.0, 0.0, 1.0)
    assert out.shape == x.shape and out.dtype == x.dtype
    assert jnp.allclose(out, ref), "mismatch (defaults)"

    # Non-default parameters exercise both folded branches.
    out2 = jax.block_until_ready(
        step_forward(x, 0.5, -2.0, 3.0, use_pallas=True)
    )
    assert jnp.allclose(out2, step_reference(x, 0.5, -2.0, 3.0)), "mismatch (custom)"

    # Multi-block aligned case with a partial trailing block (grid >= 2).
    x_big = jax.random.normal(jax.random.PRNGKey(2), (2, 4, 72, 64), dtype=jnp.float32)
    out_big = jax.block_until_ready(step_forward(x_big, 0.1, -1.0, 2.0, use_pallas=True))
    assert jnp.allclose(out_big, step_reference(x_big, 0.1, -1.0, 2.0)), "mismatch (multi-block)"

    # Ragged total (not 128-aligned) exercises the minimal pad/strip path.
    x3 = jax.random.normal(jax.random.PRNGKey(1), (2, 3, 7, 5), dtype=jnp.float32)
    out3 = jax.block_until_ready(step_forward(x3, 0.25, 1.0, 2.0, use_pallas=True))
    assert out3.shape == x3.shape
    assert jnp.allclose(out3, step_reference(x3, 0.25, 1.0, 2.0)), "mismatch (ragged)"

    # bf16 exercises dtype-aware block geometry and the astype path.
    xb = jax.random.normal(jax.random.PRNGKey(3), (2, 4, 16, 16), dtype=jnp.bfloat16)
    outb = jax.block_until_ready(step_forward(xb, 0.0, 0.0, 1.0, use_pallas=True))
    assert outb.dtype == jnp.bfloat16
    assert jnp.allclose(outb.astype(jnp.float32),
                        step_reference(xb, 0.0, 0.0, 1.0).astype(jnp.float32)), "mismatch (bf16)"

    # Auto mode: tiny tensors take the fused-XLA fallback (no kernel launch).
    out_auto = jax.block_until_ready(step_forward(x, 0.0, 0.0, 1.0))
    assert jnp.allclose(out_auto, ref), "mismatch (auto fallback)"

    print("KERNEL_OK")
</pallas_src>

<mosaic_0001>
module attributes {stable_mosaic.version = 11 : i64} {
  func.func @_step_kernel(%arg0: i32, %arg1: memref<4x512xf32, #tpu.memory_space<vmem>>, %arg2: memref<4x512xf32, #tpu.memory_space<vmem>>) attributes {dimension_semantics = [#tpu.dimension_semantics<parallel>], iteration_bounds = array<i64: 1>, scalar_prefetch = 0 : i64, scratch_operands = 0 : i64, tpu.core_type = #tpu.core_type<tc>, window_params = [{transform_indices = @transform_0, window_bounds = array<i64: 4, 512>}, {transform_indices = @transform_1, window_bounds = array<i64: 4, 512>}]} {
    %c0 = arith.constant 0 : index
    %c0_0 = arith.constant 0 : index
    %0 = vector.load %arg1[%c0, %c0_0] : memref<4x512xf32, #tpu.memory_space<vmem>>, vector<4x512xf32>
    %cst = arith.constant 0.000000e+00 : f32
    %1 = vector.broadcast %cst : f32 to vector<4x512xf32>
    %2 = arith.cmpf ogt, %0, %1 : vector<4x512xf32>
    %cst_1 = arith.constant 1.000000e+00 : f32
    %cst_2 = arith.constant 1.000000e+00 : f32
    %3 = vector.broadcast %cst_1 : f32 to vector<4x512xf32>
    %4 = vector.broadcast %cst_2 : f32 to vector<4x512xf32>
    %5 = arith.select %2, %3, %4 : vector<4x512xi1>, vector<4x512xf32>
    %c0_3 = arith.constant 0 : index
    %c0_4 = arith.constant 0 : index
    %6 = vector.load %arg2[%c0_3, %c0_4] : memref<4x512xf32, #tpu.memory_space<vmem>>, vector<4x512xf32>
    tpu.vector_store %arg2[%c0_3, %c0_4], %5 {strides = array<i32>} : memref<4x512xf32, #tpu.memory_space<vmem>>, vector<4x512xf32>,
    return
  }
  func.func @transform_0(%arg0: i32) -> (i32, i32) {
    %c0_i32 = arith.constant 0 : i32
    %c0_i32_0 = arith.constant 0 : i32
    return %arg0, %c0_i32 : i32, i32
  }
  func.func @transform_1(%arg0: i32) -> (i32, i32) {
    %c0_i32 = arith.constant 0 : i32
    %c0_i32_0 = arith.constant 0 : i32
    return %arg0, %c0_i32 : i32, i32
  }
}

</mosaic_0001>

<bundles_post_ra>
// kernel: tpu_custom_call.1
= control target key start
LH: loop header
LB: loop body
LE: loop exit
PB: predicated region body
PF: predicated region fallthrough
CT: control target
= control target key end

     0   :  { %6 = vsyncpa [#allocation3], 0  ;;  %s104_s0 = inlined_call_operand.hbm [shape: f32[4,512], index: 0, kind: input, shape index: {}]   ;;  %s105_s1 = inlined_call_operand.hbm [shape: f32[4,512], index: 1, kind: output, shape index: {}]  }
   0x1   :  { %7 = vsyncpa [#allocation4], 0  ;;  %s85_s6 = smov [#allocation2]  }
   0x2   :  { %s14_s7 = sshll.u32 %s85_s6, 4  ;;  %s15_s7 = int_to_ptr.vmem [resolvable:$true] %s14_s7 }
   0x3   :  { %s49_s8 = scalar_lea.vmem %s15_s7, 256  ;;  %p54_p1 = scmp.lt.s32.totalorder %s15_s7, %s15_s7 }
   0x4   :  { %p50_p0 = scmp.ne.s32.totalorder %s15_s7, %s49_s8  ;;  %p55_p2 = scmp.lt.s32.totalorder %s49_s8, %s49_s8 }
   0x6   :  { %p56_p3 = por %p55_p2, %p54_p1 }
   0x8   :  { %p57_p4 = pnand %p56_p3, %p50_p0 }
   0xa   :  { %60 = shalt.err (!%p57_p4)
}
   0xb   :  { %17 = dma.hbm_to_vmem [thread:$0]  %s104_s0, 256, %s15_s7, [#allocation3]  }
   0xc   :  { %81 = dma.done.wait [#allocation3], 256  }
   0xd   :  { %82 = vsyncadd [#allocation3], 4294967040  ;;  %v86_v0 = vmov 1.0   ;;  %s87_s11 = smov [#allocation5]  }
   0xe   :  { %21 = vst [vmem:[#allocation5] sm:$0xff] %v86_v0  ;;  %22 = vst [vmem:[#allocation5 + $0x8] sm:$0xff] %v86_v0  ;;  %s29_s12 = sshll.u32 %s87_s11, 4  ;;  %s30_s12 = int_to_ptr.vmem [resolvable:$true] %s29_s12 }
   0xf   :  { %s61_s13 = scalar_lea.vmem %s30_s12, 256  ;;  %p66_p6 = scmp.lt.s32.totalorder %s30_s12, %s30_s12 }
  0x10   :  { %p62_p5 = scmp.ne.s32.totalorder %s30_s12, %s61_s13  ;;  %p67_p7 = scmp.lt.s32.totalorder %s61_s13, %s61_s13 }
  0x12   :  { %p68_p8 = por %p67_p7, %p66_p6 }
  0x14   :  { %p69_p9 = pnand %p68_p8, %p62_p5 }
  0x16   :  { %72 = shalt.err (!%p69_p9)
}
  0x17   :  { %32 = dma.vmem_to_hbm [thread:$0]  %s30_s12, 256, %s105_s1, [#allocation4]  }
  0x18   :  { %83 = dma.done.wait [#allocation4], 256  }
  0x19   :  { %84 = vsyncadd [#allocation4], 4294967040 }
  0x1a   :  { %36 = vsyncpa [#allocation3], 1 }
  0x1b   :  { %37 = vsyncpa [#allocation4], 1 }

</bundles_post_ra>
